<compile_context>
chip_gen: v5e
topology: v5e:2x2
jax: 0.10.0
libtpu: 0.0.40
codegen_flags: <defaults>
</compile_context>

<pallas_src>
import functools

import jax
import jax.numpy as jnp
from jax import lax
from jax.experimental import pallas as pl
from jax.experimental.pallas import tpu as pltpu


def _cdiv(a, b):
    return -(-a // b)


def _f32(x):
    return x if x.dtype == jnp.float32 else x.astype(jnp.float32)


def _erosion_kernel(*refs, size, pad, vol_d, bd_main, td, w_in, thresh,
                    strips, use_front, use_back):
    """One grid step: td output planes over the full (Ho, Wo) window.

    refs = ([front_halo,] main, [back_halo,] out, acc_scratch)
    front/back halo blocks are (size-1, H, W) slabs of the same HBM volume.
    All slicing below is static Python; only pl.program_id(0) is traced.
    """
    halo = size - 1
    idx = 0
    f_ref = None
    if use_front:
        f_ref = refs[idx]; idx += 1
    a_ref = refs[idx]; idx += 1
    b_ref = None
    if use_back:
        b_ref = refs[idx]; idx += 1
    o_ref = refs[idx]; idx += 1
    acc_ref = refs[idx]

    i = pl.program_id(0)

    for (oh0, sh_out, in_lo, sh_in, pad_top, pad_bot) in strips:
        hsl = slice(in_lo, in_lo + sh_in)

        # ---- D direction: plane-aligned accumulation into the f32 scratch ----
        if pad == 0:
            # Hot path: per-offset segment adds, no gates, no zero-init
            # (the k == 0 term covers every row from the main block).
            acc_ref[:, :sh_in, :] = _f32(a_ref[0:td, hsl, :])
            for k in range(1, size):
                r1 = min(td, bd_main - k)      # rows fed from the main block
                if r1 > 0:
                    acc_ref[0:r1, :sh_in, :] += _f32(a_ref[k:k + r1, hsl, :])
                if r1 < td:                    # tail rows fed from the back halo
                    acc_ref[r1:td, :sh_in, :] += _f32(b_ref[0:td - r1, hsl, :])
        else:
            # Padded path: loop over the td+halo source planes of the window.
            # Each source plane has one *scalar* validity gate (zero padding /
            # clamped halo blocks) and feeds a statically-known contiguous
            # range of output planes (broadcast add).
            acc_ref[:, :sh_in, :] = jnp.zeros((td, sh_in, w_in), jnp.float32)
            for v in range(td + halo):
                q = v - pad                    # main-block-local plane index
                if use_front or use_back:      # multi-slab: route to its ref
                    if q < 0:
                        src = _f32(f_ref[halo + q:halo + q + 1, hsl, :])
                    elif q < td:
                        src = _f32(a_ref[q:q + 1, hsl, :])
                    else:
                        src = _f32(b_ref[q - td:q - td + 1, hsl, :])
                    g = i * td + q             # intended global input plane
                    src = src * ((g >= 0) & (g < vol_d)).astype(jnp.float32)
                else:
                    if q < 0 or q >= bd_main:  # statically a zero-padding plane
                        continue
                    src = _f32(a_ref[q:q + 1, hsl, :])
                r0, r1 = max(0, v - halo), min(td, v + 1)
                acc_ref[r0:r1, :sh_in, :] += src

        # ---- H direction (sublanes): zero-pad the strip borders (only at the
        # volume edges when padding > 0) and sum `size` shifted row windows.
        acc_d = acc_ref[:, :sh_in, :]
        if pad_top or pad_bot:
            parts = []
            if pad_top:
                parts.append(jnp.zeros((td, pad_top, w_in), jnp.float32))
            parts.append(acc_d)
            if pad_bot:
                parts.append(jnp.zeros((td, pad_bot, w_in), jnp.float32))
            acc_d = jnp.concatenate(parts, axis=1)
        acc_h = acc_d[:, 0:sh_out, :]
        for kh in range(1, size):
            acc_h = acc_h + acc_d[:, kh:kh + sh_out, :]

        # ---- W direction (lanes) ----
        if pad:
            zcol = jnp.zeros((td, sh_out, pad), jnp.float32)
            acc_h = jnp.concatenate([zcol, acc_h, zcol], axis=2)
        wo = acc_h.shape[2] - halo
        res = acc_h[:, :, 0:wo]
        for kw in range(1, size):
            res = res + acc_h[:, :, kw:kw + wo]

        # Compare + direct f32 mask write into the final output window.
        o_ref[:, oh0:oh0 + sh_out, :] = (res >= thresh).astype(o_ref.dtype)


def conv3d_erosion(x, size=3, padding=0, ration=1.0, *, block_d=None,
                   block_h=None, vmem_budget_bytes=None):
    """Pallas TPU equivalent of Conv3dErosion(size, padding).forward(x, ration)."""
    assert x.ndim == 5 and x.shape[0] == 1 and x.shape[1] == 1, (
        "module semantics require N=C=1 (forward reads x[0, 0])")
    vol = x[0, 0]                    # native dtype; callers may pass int8/uint8
    size = int(size)                 # occupancy masks to quarter the HBM reads
    pad = int(padding) if padding else 0
    halo = size - 1
    thresh = float(size) ** 3 * float(ration)

    if size == 1:
        # Degenerate 1x1x1 box: a pure elementwise threshold (plain JAX).
        m = (vol.astype(jnp.float32) >= thresh).astype(jnp.float32)
        if pad:
            m = jnp.pad(m, pad, constant_values=float(0.0 >= thresh))
        return m

    if pad > halo:
        # TODO(synk): padding > size-1 is degenerate for erosion; fall back to a
        # materialized zero pad instead of teaching the kernel about it.
        vol = jnp.pad(vol, pad)
        pad = 0

    D, H, W = vol.shape
    Do, Ho, Wo = D + 2 * pad - halo, H + 2 * pad - halo, W + 2 * pad - halo
    assert Do >= 1 and Ho >= 1 and Wo >= 1, "kernel larger than (padded) volume"
    in_bytes = jnp.dtype(vol.dtype).itemsize

    # ---- generation-aware VMEM budget (v5e/v6e: 128 MiB, v7x: 64 MiB) -------
    cap = 64 << 20
    try:
        cap_attr = getattr(pltpu.get_tpu_info(), "vmem_capacity_bytes", None)
        if cap_attr:
            cap = int(cap_attr)
    except Exception:
        pass
    if vmem_budget_bytes is None:
        vmem_budget_bytes = (cap * 2) // 3

    # ---- H strips (in-kernel strip mining keeps f32 temporaries ~1-2 MiB) ---
    if block_h is None:
        bh = max(8, (((1 << 20) // (4 * W)) // 8) * 8)
    else:
        bh = int(block_h)
    bh = max(1, min(bh, Ho))
    strips = []
    sh_acc_max = 1
    oh0 = 0
    while oh0 < Ho:
        sh_out = min(bh, Ho - oh0)
        in_lo = max(0, oh0 - pad)
        in_hi = min(H, oh0 + sh_out + halo - pad)
        sh_in = in_hi - in_lo
        pad_top = in_lo - (oh0 - pad)
        pad_bot = (oh0 + sh_out + halo - pad) - in_hi
        strips.append((oh0, sh_out, in_lo, sh_in, pad_top, pad_bot))
        sh_acc_max = max(sh_acc_max, sh_in)
        oh0 += sh_out

    # ---- D slab size from the VMEM budget ------------------------------------
    max_td = (min(Do, D) // halo) * halo
    multi = (max_td >= halo) and (D > halo)
    if multi:
        td_cap = 64 if pad > 0 else 256        # padded path unrolls over planes
        per_plane = 2 * H * W * in_bytes + 2 * Ho * Wo * 4 + 16 * sh_acc_max * W
        fixed = 2 * (2 if pad > 0 else 1) * halo * H * W * in_bytes
        if block_d is None:
            td = max(halo, (vmem_budget_bytes - fixed) // max(per_plane, 1))
        else:
            td = max(halo, int(block_d))
        td = max(halo, (min(td, max_td, td_cap) // halo) * halo)
        bd_main = td
    else:
        td = Do                                 # shallow volume: one D block
        bd_main = D

    n_steps = _cdiv(Do, td)
    n_main = _cdiv(D, bd_main)
    n_hb = _cdiv(D, halo)
    stride = td // halo if multi else 0

    use_back = multi
    use_front = multi and pad > 0

    in_specs = []
    operands = []
    if use_front:
        # Front D-halo slab (planes [i*td - halo, i*td)); clamped at i == 0,
        # where the intended planes are the zero padding and get gated to 0.
        in_specs.append(pl.BlockSpec(
            (halo, H, W), lambda i: (jnp.maximum(i * stride - 1, 0), 0, 0)))
        operands.append(vol)
    # Main D slab.
    in_specs.append(pl.BlockSpec(
        (bd_main, H, W), lambda i: (jnp.minimum(i, n_main - 1), 0, 0)))
    operands.append(vol)
    if use_back:
        # Back D-halo slab (planes [(i+1)*td, (i+1)*td + halo)); clamped near
        # the end of the volume, where its contributions are either gated to 0
        # (padded path) or only feed output planes that Pallas discards.
        in_specs.append(pl.BlockSpec(
            (halo, H, W), lambda i: (jnp.minimum((i + 1) * stride, n_hb - 1), 0, 0)))
        operands.append(vol)

    kernel = functools.partial(
        _erosion_kernel, size=size, pad=pad, vol_d=D, bd_main=bd_main, td=td,
        w_in=W, thresh=thresh, strips=tuple(strips),
        use_front=use_front, use_back=use_back)

    # Double-buffered input/halo/output blocks + f32 scratch + strip temporaries.
    est = (2 * (bd_main + (halo if use_back else 0) + (halo if use_front else 0))
           * H * W * in_bytes
           + 2 * td * Ho * Wo * 4
           + td * sh_acc_max * W * 4
           + 4 * td * (sh_acc_max + 2 * pad) * (W + 2 * pad) * 4)
    vmem_limit = int(min(max(est + est // 3 + (4 << 20), 32 << 20), (cap * 9) // 10))

    return pl.pallas_call(
        kernel,
        out_shape=jax.ShapeDtypeStruct((Do, Ho, Wo), jnp.float32),
        grid=(n_steps,),
        in_specs=in_specs,
        out_specs=pl.BlockSpec((td, Ho, Wo), lambda i: (i, 0, 0)),
        scratch_shapes=[pltpu.VMEM((td, sh_acc_max, W), jnp.float32)],
        compiler_params=pltpu.CompilerParams(
            dimension_semantics=("parallel",),
            vmem_limit_bytes=vmem_limit),
    )(*operands)


def _reference(x, size=3, padding=0, ration=1.0):
    """Pure-JAX reference mirroring F.conv3d(ones kernel) + threshold."""
    w = jnp.ones((1, 1, size, size, size), jnp.float32)
    y = lax.conv_general_dilated(
        x.astype(jnp.float32), w, window_strides=(1, 1, 1),
        padding=[(padding, padding)] * 3,
        dimension_numbers=("NCDHW", "OIDHW", "NCDHW"))
    return (y[0, 0] >= size ** 3 * ration).astype(jnp.float32)


if __name__ == "__main__":
    key = jax.random.PRNGKey(0)
    # Binary occupancy volume (N=1, C=1, D=16, H=16, W=128), W lane-dense.
    x = (jax.random.uniform(key, (1, 1, 16, 16, 128)) > 0.5).astype(jnp.float32)

    # 1) Default path (padding=0): single D slab, direct (Do, Ho, Wo) f32 write.
    ref = _reference(x, size=3, padding=0, ration=1.0)
    out = jax.block_until_ready(conv3d_erosion(x, size=3, padding=0, ration=1.0))
    assert out.shape == (14, 14, 126), out.shape
    assert jnp.array_equal(out, ref), "mismatch (default path)"

    # 2) Forced small D slabs + H strips: multi-step grid, back-halo blocks,
    #    partial last output block, in-kernel H strip mining.
    out_t = jax.block_until_ready(
        conv3d_erosion(x, size=3, padding=0, ration=1.0, block_d=4, block_h=8))
    assert jnp.array_equal(out_t, ref), "mismatch (tiled path)"

    # 3) Folded zero padding + fractional ration (front/back halo slabs with
    #    scalar gates, H/W border padding in VMEM, lane-dense W output).
    ref_p = _reference(x, size=3, padding=1, ration=0.5)
    out_p = jax.block_until_ready(conv3d_erosion(x, size=3, padding=1, ration=0.5))
    assert out_p.shape == (16, 16, 128), out_p.shape
    assert jnp.array_equal(out_p, ref_p), "mismatch (padded path)"

    out_pt = jax.block_until_ready(
        conv3d_erosion(x, size=3, padding=1, ration=0.5, block_d=4, block_h=8))
    assert jnp.array_equal(out_pt, ref_p), "mismatch (padded tiled path)"

    # 4) Larger structuring element with "same"-style padding and D/H tiling.
    x2 = (jax.random.uniform(jax.random.PRNGKey(0), (1, 1, 12, 24, 128)) > 0.35
          ).astype(jnp.float32)
    ref_5 = _reference(x2, size=5, padding=2, ration=0.6)
    out_5 = jax.block_until_ready(
        conv3d_erosion(x2, size=5, padding=2, ration=0.6, block_d=4, block_h=8))
    assert out_5.shape == (12, 24, 128), out_5.shape
    assert jnp.array_equal(out_5, ref_5), "mismatch (size-5 padded path)"

    print("KERNEL_OK")
</pallas_src>

<mosaic_0001>
module attributes {stable_mosaic.version = 11 : i64} {
  func.func @_erosion_kernel(%arg0: i32, %arg1: memref<14x16x128xf32, #tpu.memory_space<vmem>>, %arg2: memref<2x16x128xf32, #tpu.memory_space<vmem>>, %arg3: memref<14x14x126xf32, #tpu.memory_space<vmem>>, %arg4: memref<14x16x128xf32, #tpu.memory_space<vmem>>) attributes {dimension_semantics = [#tpu.dimension_semantics<parallel>], iteration_bounds = array<i64: 1>, scalar_prefetch = 0 : i64, scratch_operands = 1 : i64, tpu.core_type = #tpu.core_type<tc>, window_params = [{transform_indices = @transform_0, window_bounds = array<i64: 14, 16, 128>}, {transform_indices = @transform_1, window_bounds = array<i64: 2, 16, 128>}, {transform_indices = @transform_2, window_bounds = array<i64: 14, 14, 126>}]} {
    %c0 = arith.constant 0 : index
    %c0_0 = arith.constant 0 : index
    %c0_1 = arith.constant 0 : index
    %0 = vector.load %arg1[%c0, %c0_0, %c0_1] : memref<14x16x128xf32, #tpu.memory_space<vmem>>, vector<14x16x128xf32>
    %c0_2 = arith.constant 0 : index
    %c0_3 = arith.constant 0 : index
    %c0_4 = arith.constant 0 : index
    %1 = vector.load %arg4[%c0_2, %c0_3, %c0_4] : memref<14x16x128xf32, #tpu.memory_space<vmem>>, vector<14x16x128xf32>
    tpu.vector_store %arg4[%c0_2, %c0_3, %c0_4], %0 {strides = array<i32>} : memref<14x16x128xf32, #tpu.memory_space<vmem>>, vector<14x16x128xf32>,
    %c0_5 = arith.constant 0 : index
    %c0_6 = arith.constant 0 : index
    %c0_7 = arith.constant 0 : index
    %2 = vector.load %arg4[%c0_5, %c0_6, %c0_7] : memref<14x16x128xf32, #tpu.memory_space<vmem>>, vector<13x16x128xf32>
    %c1 = arith.constant 1 : index
    %c0_8 = arith.constant 0 : index
    %c0_9 = arith.constant 0 : index
    %3 = vector.load %arg1[%c1, %c0_8, %c0_9] : memref<14x16x128xf32, #tpu.memory_space<vmem>>, vector<13x16x128xf32>
    %4 = arith.addf %2, %3 : vector<13x16x128xf32>
    %c0_10 = arith.constant 0 : index
    %c0_11 = arith.constant 0 : index
    %c0_12 = arith.constant 0 : index
    %5 = vector.load %arg4[%c0_10, %c0_11, %c0_12] : memref<14x16x128xf32, #tpu.memory_space<vmem>>, vector<13x16x128xf32>
    tpu.vector_store %arg4[%c0_10, %c0_11, %c0_12], %4 {strides = array<i32>} : memref<14x16x128xf32, #tpu.memory_space<vmem>>, vector<13x16x128xf32>,
    %c13 = arith.constant 13 : index
    %c0_13 = arith.constant 0 : index
    %c0_14 = arith.constant 0 : index
    %6 = vector.load %arg4[%c13, %c0_13, %c0_14] : memref<14x16x128xf32, #tpu.memory_space<vmem>>, vector<1x16x128xf32>
    %c0_15 = arith.constant 0 : index
    %c0_16 = arith.constant 0 : index
    %c0_17 = arith.constant 0 : index
    %7 = vector.load %arg2[%c0_15, %c0_16, %c0_17] : memref<2x16x128xf32, #tpu.memory_space<vmem>>, vector<1x16x128xf32>
    %8 = arith.addf %6, %7 : vector<1x16x128xf32>
    %c13_18 = arith.constant 13 : index
    %c0_19 = arith.constant 0 : index
    %c0_20 = arith.constant 0 : index
    %9 = vector.load %arg4[%c13_18, %c0_19, %c0_20] : memref<14x16x128xf32, #tpu.memory_space<vmem>>, vector<1x16x128xf32>
    tpu.vector_store %arg4[%c13_18, %c0_19, %c0_20], %8 {strides = array<i32>} : memref<14x16x128xf32, #tpu.memory_space<vmem>>, vector<1x16x128xf32>,
    %c0_21 = arith.constant 0 : index
    %c0_22 = arith.constant 0 : index
    %c0_23 = arith.constant 0 : index
    %10 = vector.load %arg4[%c0_21, %c0_22, %c0_23] : memref<14x16x128xf32, #tpu.memory_space<vmem>>, vector<12x16x128xf32>
    %c2 = arith.constant 2 : index
    %c0_24 = arith.constant 0 : index
    %c0_25 = arith.constant 0 : index
    %11 = vector.load %arg1[%c2, %c0_24, %c0_25] : memref<14x16x128xf32, #tpu.memory_space<vmem>>, vector<12x16x128xf32>
    %12 = arith.addf %10, %11 : vector<12x16x128xf32>
    %c0_26 = arith.constant 0 : index
    %c0_27 = arith.constant 0 : index
    %c0_28 = arith.constant 0 : index
    %13 = vector.load %arg4[%c0_26, %c0_27, %c0_28] : memref<14x16x128xf32, #tpu.memory_space<vmem>>, vector<12x16x128xf32>
    tpu.vector_store %arg4[%c0_26, %c0_27, %c0_28], %12 {strides = array<i32>} : memref<14x16x128xf32, #tpu.memory_space<vmem>>, vector<12x16x128xf32>,
    %c12 = arith.constant 12 : index
    %c0_29 = arith.constant 0 : index
    %c0_30 = arith.constant 0 : index
    %14 = vector.load %arg4[%c12, %c0_29, %c0_30] : memref<14x16x128xf32, #tpu.memory_space<vmem>>, vector<2x16x128xf32>
    %c0_31 = arith.constant 0 : index
    %c0_32 = arith.constant 0 : index
    %c0_33 = arith.constant 0 : index
    %15 = vector.load %arg2[%c0_31, %c0_32, %c0_33] : memref<2x16x128xf32, #tpu.memory_space<vmem>>, vector<2x16x128xf32>
    %16 = arith.addf %14, %15 : vector<2x16x128xf32>
    %c12_34 = arith.constant 12 : index
    %c0_35 = arith.constant 0 : index
    %c0_36 = arith.constant 0 : index
    %17 = vector.load %arg4[%c12_34, %c0_35, %c0_36] : memref<14x16x128xf32, #tpu.memory_space<vmem>>, vector<2x16x128xf32>
    tpu.vector_store %arg4[%c12_34, %c0_35, %c0_36], %16 {strides = array<i32>} : memref<14x16x128xf32, #tpu.memory_space<vmem>>, vector<2x16x128xf32>,
    %c0_37 = arith.constant 0 : index
    %c0_38 = arith.constant 0 : index
    %c0_39 = arith.constant 0 : index
    %18 = vector.load %arg4[%c0_37, %c0_38, %c0_39] : memref<14x16x128xf32, #tpu.memory_space<vmem>>, vector<14x16x128xf32>
    %19 = vector.extract_strided_slice %18 {offsets = [0, 0, 0], sizes = [14, 14, 128], strides = [1, 1, 1]} : vector<14x16x128xf32> to vector<14x14x128xf32>
    %20 = vector.extract_strided_slice %18 {offsets = [0, 1, 0], sizes = [14, 14, 128], strides = [1, 1, 1]} : vector<14x16x128xf32> to vector<14x14x128xf32>
    %21 = arith.addf %19, %20 : vector<14x14x128xf32>
    %22 = vector.extract_strided_slice %18 {offsets = [0, 2, 0], sizes = [14, 14, 128], strides = [1, 1, 1]} : vector<14x16x128xf32> to vector<14x14x128xf32>
    %23 = arith.addf %21, %22 : vector<14x14x128xf32>
    %24 = vector.extract_strided_slice %23 {offsets = [0, 0, 0], sizes = [14, 14, 126], strides = [1, 1, 1]} : vector<14x14x128xf32> to vector<14x14x126xf32>
    %25 = vector.extract_strided_slice %23 {offsets = [0, 0, 1], sizes = [14, 14, 126], strides = [1, 1, 1]} : vector<14x14x128xf32> to vector<14x14x126xf32>
    %26 = arith.addf %24, %25 : vector<14x14x126xf32>
    %27 = vector.extract_strided_slice %23 {offsets = [0, 0, 2], sizes = [14, 14, 126], strides = [1, 1, 1]} : vector<14x14x128xf32> to vector<14x14x126xf32>
    %28 = arith.addf %26, %27 : vector<14x14x126xf32>
    %cst = arith.constant 2.700000e+01 : f32
    %29 = vector.broadcast %cst : f32 to vector<14x14x126xf32>
    %30 = arith.cmpf oge, %28, %29 : vector<14x14x126xf32>
    %31 = arith.extui %30 : vector<14x14x126xi1> to vector<14x14x126xi32>
    %32 = arith.sitofp %31 : vector<14x14x126xi32> to vector<14x14x126xf32>
    %c0_40 = arith.constant 0 : index
    %c0_41 = arith.constant 0 : index
    %c0_42 = arith.constant 0 : index
    %33 = vector.load %arg3[%c0_40, %c0_41, %c0_42] : memref<14x14x126xf32, #tpu.memory_space<vmem>>, vector<14x14x126xf32>
    tpu.vector_store %arg3[%c0_40, %c0_41, %c0_42], %32 {strides = array<i32>} : memref<14x14x126xf32, #tpu.memory_space<vmem>>, vector<14x14x126xf32>,
    return
  }
  func.func @transform_0(%arg0: i32) -> (i32, i32, i32) {
    %c1_i32 = arith.constant 1 : i32
    %0 = arith.minsi %arg0, %c1_i32 : i32
    %c0_i32 = arith.constant 0 : i32
    %c0_i32_0 = arith.constant 0 : i32
    %c0_i32_1 = arith.constant 0 : i32
    return %0, %c0_i32, %c0_i32_0 : i32, i32, i32
  }
  func.func @transform_1(%arg0: i32) -> (i32, i32, i32) {
    %c1_i32 = arith.constant 1 : i32
    %0 = arith.addi %arg0, %c1_i32 : i32
    %c7_i32 = arith.constant 7 : i32
    %1 = arith.muli %0, %c7_i32 : i32
    %c7_i32_0 = arith.constant 7 : i32
    %2 = arith.minsi %1, %c7_i32_0 : i32
    %c0_i32 = arith.constant 0 : i32
    %c0_i32_1 = arith.constant 0 : i32
    %c0_i32_2 = arith.constant 0 : i32
    return %2, %c0_i32, %c0_i32_1 : i32, i32, i32
  }
  func.func @transform_2(%arg0: i32) -> (i32, i32, i32) {
    %c0_i32 = arith.constant 0 : i32
    %c0_i32_0 = arith.constant 0 : i32
    %c0_i32_1 = arith.constant 0 : i32
    return %arg0, %c0_i32, %c0_i32_0 : i32, i32, i32
  }
}

</mosaic_0001>

<bundles_post_ra>
// kernel: tpu_custom_call.1
= control target key start
LH: loop header
LB: loop body
LE: loop exit
PB: predicated region body
PF: predicated region fallthrough
CT: control target
= control target key end

     0   :  { %7 = vsyncpa [#allocation4], 0  ;;  %s1516_s0 = inlined_call_operand.hbm [shape: f32[16,16,128], index: 0, kind: input, shape index: {}]   ;;  %s1517_s1 = inlined_call_operand.hbm [shape: f32[16,16,128], index: 1, kind: input, shape index: {}]   ;;  %s1518_s2 = inlined_call_operand.hbm [shape: f32[14,14,126], index: 2, kind: output, shape index: {}]  }
   0x1   :  { %8 = vsyncpa [#allocation7], 0 }
   0x2   :  { %9 = vsyncpa [#allocation5], 0  ;;  %s14_s11 = sshll.u32 %s1516_s0, 4  ;;  %s1097_s12 = smov [#allocation3]   ;;  %s15_s11 = int_to_ptr.hbm [resolvable:$true] %s14_s11 }
   0x3   :  { %s16_s13 = sshll.u32 %s1097_s12, 4  ;;  %s34_s16 = scalar_lea.hbm %s1517_s1, 224  ;;  %s17_s13 = int_to_ptr.vmem [resolvable:$true] %s16_s13 }
   0x4   :  { %s1098_s17 = smov 128   ;;  %s1099_s18 = smov 8  }
   0x5   :  { %22 = dma.hbm_to_vmem [thread:$0]  %s15_s11, 3584, %s17_s13, [#allocation4], %s1098_s17, %s1098_s17, %s1099_s18  }
   0x6   :  { %s35_s19 = sshll.u32 %s34_s16, 4  ;;  %s1100_s20 = smov [#allocation6]   ;;  %s36_s19 = int_to_ptr.hbm [resolvable:$true] %s35_s19 }
   0x7   :  { %s37_s21 = sshll.u32 %s1100_s20, 4  ;;  %s38_s21 = int_to_ptr.vmem [resolvable:$true] %s37_s21 }
   0x8   :  { %43 = dma.hbm_to_vmem [thread:$0]  %s36_s19, 512, %s38_s21, [#allocation7], %s1098_s17, %s1098_s17, %s1099_s18  }
   0x9   :  { %1091 = dma.done.wait [#allocation4], 3584  }
   0xa   :  { %1092 = vsyncadd [#allocation4], 4294963712 }
   0xb   :  { %1093 = dma.done.wait [#allocation7], 512  }
   0xc   :  { %1094 = vsyncadd [#allocation7], 4294966784  ;;  %v62_v0 = vld [vmem:[#allocation3 + $0x28] sm:$0xff]  ;;  %v145_v1 = vld [vmem:[#allocation3 + $0x38] sm:$0xff]  ;;  %vm397_vm0 = vcmask 1046528   ;;  %vm496_vm1 = vcmask 1045504  }
   0xd   :  { %v257_v2 = vld [vmem:[#allocation3 + $0x48] sm:$0xff]  ;;  %v171_v3 = vadd.f32 %v145_v1, %v62_v0  ;;  %v60_v4 = vld [vmem:[#allocation3 + $0x18] sm:$0xff]  ;;  %v61_v6 = vld [vmem:[#allocation3 + $0x20] sm:$0xff]  ;;  %s1101_s0 = smov 127   ;;  %s1102_s1 = smov 126   ;;  %vm933_vm2 = vcmask 1029120  }
   0xe   :  { %v58_v5 = vld [vmem:[#allocation3 + $0x8] sm:$0xff]  ;;  %v173_v7 = vadd.f32 %v257_v2, %v145_v1  ;;  %v169_v8 = vadd.f32 %v62_v0, %v60_v4  ;;  %v144_v10 = vld [vmem:[#allocation3 + $0x30] sm:$0xff]  ;;  %v256_v11 = vld [vmem:[#allocation3 + $0x40] sm:$0xff]  ;;  %vm931_vm4 = vcmask 1031168   ;;  %s1104_s22 = smov [#allocation8]   ;;  %s967_s26 = sshll.u32 %s1518_s2, 4  ;;  %s968_s26 = int_to_ptr.hbm [resolvable:$true] %s967_s26 }
   0xf   :  { %v167_v9 = vadd.f32 %v60_v4, %v58_v5  ;;  %v259_v12 = vld [vmem:[#allocation3 + $0x58] sm:$0xff]  ;;  %v281_v13 = vadd.f32 %v257_v2, %v171_v3  ;;  %v170_v14 = vadd.f32 %v144_v10, %v61_v6  ;;  %v57_v16 = vld [vmem:[#allocation3] sm:$0xff]  ;;  %v140_v17 = vld [vmem:[#allocation3 + $0x10] sm:$0xff]  ;;  %v172_v54 = vadd.f32 %v256_v11, %v144_v10  ;;  %s965_s23 = sshll.u32 %s1104_s22, 4  ;;  %s966_s23 = int_to_ptr.vmem [resolvable:$true] %s965_s23 }
  0x10   :  { %v1132_v15 = vadd.f32 %v259_v12, %v173_v7  ;;  %v148_v18 = vld [vmem:[#allocation3 + $0x50] sm:$0xff]  ;;  %v1134_v19 = vadd.f32 %v169_v8, %v145_v1  ;;  %v166_v21 = vadd.f32 %v140_v17, %v57_v16  ;;  %v1139_v31 = vld [vmem:[#allocation3 + $0x60] sm:$0xff]  ;;  %v175_v35 = vadd.f32 %v259_v12, %v257_v2  ;;  %v261_v40 = vld [vmem:[#allocation3 + $0x68] sm:$0xff] }
  0x11   :  { %v277_v20 = vadd.f32 %v167_v9, %v62_v0  ;;  %v174_v22 = vadd.f32 %v256_v11, %v148_v18  ;;  %v405_v23 = vrot.slane %v281_v13, 1  ;;  %v504_v24 = vrot.slane %v281_v13, 2  ;;  %v263_v63 = vld [vmem:[#allocation3 + $0x78] sm:$0xff]  ;;  %v262_v0 = vld [vmem:[#allocation3 + $0x70] sm:$0xff]  ;;  %v155_v16 = vld [vmem:[#allocation3 + $0x88] sm:$0xff] }
  0x12   :  { %v280_v25 = vadd.f32 %v256_v11, %v170_v14  ;;  %v408_v26 = vrot.slane %v1132_v15, 1  ;;  %v402_v27 = vrot.slane %v1134_v19, 1  ;;  %v501_v28 = vrot.slane %v1134_v19, 2  ;;  %v154_v14 = vld [vmem:[#allocation3 + $0x80] sm:$0xff] }
  0x13   :  { %v399_v29 = vrot.slane %v277_v20, 1  ;;  %v498_v30 = vrot.slane %v277_v20, 2  ;;  %v473_v32 = vadd.f32 %v405_v23, %v281_v13  ;;  %v276_v39 = vadd.f32 %v166_v21, %v61_v6 }
  0x14   :  { %v404_v33 = vrot.slane %v280_v25, 1  ;;  %v503_v34 = vrot.slane %v280_v25, 2  ;;  %v471_v36 = vadd.f32 %v402_v27, %v1134_v19  ;;  %v475_v38 = vadd.f32 %v408_v26, %v1132_v15 }
  0x15   :  { %v469_v37 = vadd.f32 %v399_v29, %v277_v20  ;;  %v1145_v41 = vadd.f32 %v504_v24, %v473_v32  ;;  %v507_v43 = vrot.slane %v1132_v15, 2  ;;  %v284_v44 = vadd.f32 %v1139_v31, %v174_v22  ;;  %v266_v15 = vld [vmem:[#allocation3 + $0x90] sm:$0xff]  ;;  %v267_v32 = vld [vmem:[#allocation3 + $0x98] sm:$0xff] }
  0x16   :  { %v406_v42 = vsel %vm397_vm0, %v404_v33, %v405_v23  ;;  %v1152_v45 = vadd.f32 %v501_v28, %v471_v36  ;;  %v398_v48 = vrot.slane %v276_v39, 1  ;;  %v497_v49 = vrot.slane %v276_v39, 2 }
  0x17   :  { %v1154_v46 = vadd.f32 %v498_v30, %v469_v37  ;;  %633 = vrot.lane.b32.xlu2 %v1145_v41, %s1101_s0  ;;  %v472_v47 = vadd.f32 %v406_v42, %v280_v25  ;;  %v1158_v50 = vadd.f32 %v261_v40, %v175_v35  ;;  %v505_v51 = vsel %vm496_vm1, %v503_v34, %v504_v24 }
  0x18   :  { %629 = vrot.lane.b32.xlu1 %v1152_v45, %s1101_s0  ;;  %v410_v52 = vrot.slane %v284_v44, 1  ;;  %v168_v53 = vadd.f32 %v140_v17, %v61_v6  ;;  %v1165_v55 = vadd.f32 %v507_v43, %v475_v38  ;;  %v400_v56 = vsel %vm397_vm0, %v398_v48, %v399_v29 }
  0x19   :  { %625 = vrot.lane.b32.xlu0 %v1154_v46, %s1101_s0  ;;  %v499_v57 = vsel %vm496_vm1, %v497_v49, %v498_v30  ;;  %v411_v58 = vrot.slane %v1158_v50, 1  ;;  %v468_v59 = vadd.f32 %v400_v56, %v276_v39  ;;  %v282_v61 = vadd.f32 %v172_v54, %v148_v18  ;;  %v269_v54 = vld [vmem:[#allocation3 + $0xa8] sm:$0xff] }
  0x1a   :  { %v278_v60 = vadd.f32 %v168_v53, %v144_v10  ;;  %v177_v62 = vadd.f32 %v261_v40, %v259_v12  ;;  %v1170_v1 = vadd.f32 %v505_v51, %v472_v47  ;;  %v509_v2 = vrot.slane %v284_v44, 2 }
  0x1b   :  { %v510_v3 = vrot.slane %v1158_v50, 2  ;;  %v176_v4 = vadd.f32 %v1139_v31, %v148_v18  ;;  %v1174_v5 = vadd.f32 %v499_v57, %v468_v59  ;;  %v412_v6 = vsel %vm397_vm0, %v410_v52, %v411_v58  ;;  %v268_v57 = vld [vmem:[#allocation3 + $0xa0] sm:$0xff] }
  0x1c   :  { %v401_v7 = vrot.slane %v278_v60, 1  ;;  %v500_v8 = vrot.slane %v278_v60, 2  ;;  %v407_v9 = vrot.slane %v282_v61, 1  ;;  %v506_v11 = vrot.slane %v282_v61, 2 }
  0x1d   :  { %v287_v10 = vadd.f32 %v263_v63, %v177_v62  ;;  %v286_v13 = vadd.f32 %v262_v0, %v176_v4  ;;  %v476_v17 = vadd.f32 %v412_v6, %v284_v44  ;;  %v511_v18 = vsel %vm496_vm1, %v509_v2, %v510_v3 }
  0x1e   :  { %v403_v12 = vsel %vm397_vm0, %v401_v7, %v402_v27  ;;  %v409_v21 = vsel %vm397_vm0, %v407_v9, %v408_v26  ;;  %v502_v22 = vsel %vm496_vm1, %v500_v8, %v501_v28  ;;  %v508_v24 = vsel %vm496_vm1, %v506_v11, %v507_v43  ;;  %v160_v7 = vld [vmem:[#allocation3 + $0xb0] sm:$0xff]  ;;  %v161_v8 = vld [vmem:[#allocation3 + $0xb8] sm:$0xff] }
  0x1f   :  { %631 = vrot.lane.b32.xlu2 %v1170_v1, %s1101_s0  ;;  %v470_v20 = vadd.f32 %v403_v12, %v278_v60  ;;  %v474_v23 = vadd.f32 %v409_v21, %v282_v61  ;;  %v414_v25 = vrot.slane %v287_v10, 1  ;;  %v413_v27 = vrot.slane %v286_v13, 1 }
  0x20   :  { %637 = vrot.lane.b32.xlu1 %v1165_v55, %s1101_s0  ;;  %v180_v29 = vadd.f32 %v262_v0, %v154_v14  ;;  %v181_v30 = vadd.f32 %v263_v63, %v155_v16  ;;  %v179_v26 = vadd.f32 %v263_v63, %v261_v40  ;;  %v1192_v33 = vadd.f32 %v511_v18, %v476_v17  ;;  %v272_v18 = vld [vmem:[#allocation3 + $0xc0] sm:$0xff] }
  0x21   :  { %623 = vrot.lane.b32.xlu0 %v1174_v5, %s1101_s0  ;;  %v1194_v34 = vadd.f32 %v502_v22, %v470_v20  ;;  %v1196_v35 = vadd.f32 %v508_v24, %v474_v23  ;;  %v178_v28 = vadd.f32 %v262_v0, %v1139_v31  ;;  %v513_v37 = vrot.slane %v287_v10, 2  ;;  %v273_v20 = vld [vmem:[#allocation3 + $0xc8] sm:$0xff] }
  0x22   :  { %v290_v36 = vadd.f32 %v266_v15, %v180_v29  ;;  %v1198_v19 = vadd.f32 %v267_v32, %v181_v30  ;;  %v415_v38 = vsel %vm397_vm0, %v413_v27, %v414_v25  ;;  %v512_v39 = vrot.slane %v286_v13, 2 }
  0x23   :  { %v289_v42 = vadd.f32 %v179_v26, %v155_v16  ;;  %v288_v43 = vadd.f32 %v178_v28, %v154_v14  ;;  %v479_v40 = vadd.f32 %v414_v25, %v287_v10  ;;  %v477_v44 = vadd.f32 %v411_v58, %v1158_v50 }
  0x24   :  { %v478_v47 = vadd.f32 %v415_v38, %v286_v13  ;;  %v419_v31 = vrot.slane %v290_v36, 1  ;;  %v420_v48 = vrot.slane %v1198_v19, 1  ;;  %v183_v49 = vadd.f32 %v267_v32, %v155_v16 }
  0x25   :  { %v514_v51 = vsel %vm496_vm1, %v512_v39, %v513_v37  ;;  %v417_v52 = vrot.slane %v289_v42, 1  ;;  %v416_v53 = vrot.slane %v288_v43, 1  ;;  %v182_v56 = vadd.f32 %v266_v15, %v154_v14 }
  0x26   :  { %v1211_v59 = vadd.f32 %v513_v37, %v479_v40  ;;  %v518_v50 = vrot.slane %v290_v36, 2  ;;  %v519_v58 = vrot.slane %v1198_v19, 2  ;;  %v1214_v60 = vadd.f32 %v514_v51, %v478_v47  ;;  %v274_v51 = vld [vmem:[#allocation3 + $0xd0] sm:$0xff] }
  0x27   :  { %639 = vrot.lane.b32.xlu2 %v1192_v33, %s1101_s0  ;;  %v1216_v61 = vadd.f32 %v510_v3, %v477_v44  ;;  %v421_v62 = vsel %vm397_vm0, %v419_v31, %v420_v48  ;;  %v293_v63 = vadd.f32 %v269_v54, %v183_v49  ;;  %v516_v0 = vrot.slane %v289_v42, 2  ;;  %v275_v31 = vld [vmem:[#allocation3 + $0xd8] sm:$0xff] }
  0x28   :  { %627 = vrot.lane.b32.xlu1 %v1194_v34, %s1101_s0  ;;  %v418_v2 = vsel %vm397_vm0, %v416_v53, %v417_v52  ;;  %v515_v4 = vrot.slane %v288_v43, 2  ;;  %v292_v6 = vadd.f32 %v268_v57, %v182_v56  ;;  %v482_v9 = vadd.f32 %v421_v62, %v290_v36 }
  0x29   :  { %635 = vrot.lane.b32.xlu0 %v1196_v35, %s1101_s0  ;;  %v520_v11 = vsel %vm496_vm1, %v518_v50, %v519_v58  ;;  %v481_v10 = vadd.f32 %v417_v52, %v289_v42  ;;  %v480_v3 = vadd.f32 %v418_v2, %v288_v43  ;;  %v423_v13 = vrot.slane %v293_v63, 1  ;;  %v221_v50 = vld [vmem:[#allocation6] sm:$0xff] }
  0x2a   :  { %v186_v12 = vadd.f32 %v268_v57, %v160_v7  ;;  %v187_v14 = vadd.f32 %v269_v54, %v161_v8  ;;  %v517_v16 = vsel %vm496_vm1, %v515_v4, %v516_v0  ;;  %v422_v17 = vrot.slane %v292_v6, 1  ;;  %v222_v4 = vld [vmem:[#allocation6 + $0x8] sm:$0xff] }
  0x2b   :  { %v185_v21 = vadd.f32 %v269_v54, %v267_v32  ;;  %v184_v22 = vadd.f32 %v268_v57, %v266_v15  ;;  %v1228_v23 = vadd.f32 %v520_v11, %v482_v9  ;;  %v522_v24 = vrot.slane %v293_v63, 2 }
  0x2c   :  { %v1230_v25 = vadd.f32 %v516_v0, %v481_v10  ;;  %v1232_v27 = vadd.f32 %v517_v16, %v480_v3  ;;  %v296_v29 = vadd.f32 %v272_v18, %v186_v12  ;;  %v1234_v30 = vadd.f32 %v273_v20, %v187_v14  ;;  %v331_v12 = vld [vmem:[#allocation6 + $0x10] sm:$0xff]  ;;  %v332_v14 = vld [vmem:[#allocation6 + $0x18] sm:$0xff] }
  0x2d   :  { %v424_v26 = vsel %vm397_vm0, %v422_v17, %v423_v13  ;;  %v521_v36 = vrot.slane %v292_v6, 2  ;;  %v295_v28 = vadd.f32 %v185_v21, %v161_v8  ;;  %v294_v37 = vadd.f32 %v184_v22, %v160_v7 }
  0x2e   :  { %v485_v32 = vadd.f32 %v423_v13, %v293_v63  ;;  %v483_v15 = vadd.f32 %v420_v48, %v1198_v19  ;;  %v484_v38 = vadd.f32 %v424_v26, %v292_v6  ;;  %v428_v39 = vrot.slane %v296_v29, 1 }
  0x2f   :  { %645 = vrot.lane.b32.xlu2 %v1211_v59, %s1101_s0  ;;  %v429_v42 = vrot.slane %v1234_v30, 1  ;;  %v189_v43 = vadd.f32 %v273_v20, %v161_v8  ;;  %v523_v40 = vsel %vm496_vm1, %v521_v36, %v522_v24  ;;  %v426_v44 = vrot.slane %v295_v28, 1 }
  0x30   :  { %643 = vrot.lane.b32.xlu1 %v1214_v60, %s1101_s0  ;;  %v425_v47 = vrot.slane %v294_v37, 1  ;;  %v188_v49 = vadd.f32 %v272_v18, %v160_v7  ;;  %v1246_v52 = vadd.f32 %v522_v24, %v485_v32  ;;  %v527_v19 = vrot.slane %v296_v29, 2 }
  0x31   :  { %641 = vrot.lane.b32.xlu0 %v1216_v61, %s1101_s0  ;;  %v528_v48 = vrot.slane %v1234_v30, 2  ;;  %v1249_v53 = vadd.f32 %v523_v40, %v484_v38  ;;  %v1251_v54 = vadd.f32 %v519_v58, %v483_v15  ;;  %v430_v56 = vsel %vm397_vm0, %v428_v39, %v429_v42 }
  0x32   :  { %v299_v57 = vadd.f32 %v275_v31, %v189_v43  ;;  %v525_v62 = vrot.slane %v295_v28, 2  ;;  %v427_v63 = vsel %vm397_vm0, %v425_v47, %v426_v44  ;;  %v524_v0 = vrot.slane %v294_v37, 2 }
  0x33   :  { %v298_v2 = vadd.f32 %v274_v51, %v188_v49  ;;  %v488_v6 = vadd.f32 %v430_v56, %v296_v29  ;;  %v529_v7 = vsel %vm496_vm1, %v527_v19, %v528_v48  ;;  %v223_v8 = vadd.f32 %v274_v51, %v221_v50 }
  0x34   :  { %v487_v58 = vadd.f32 %v426_v44, %v295_v28  ;;  %v486_v9 = vadd.f32 %v427_v63, %v294_v37  ;;  %v432_v11 = vrot.slane %v299_v57, 1  ;;  %v224_v10 = vadd.f32 %v275_v31, %v222_v4 }
  0x35   :  { %v526_v3 = vsel %vm496_vm1, %v524_v0, %v525_v62  ;;  %v431_v13 = vrot.slane %v298_v2, 1  ;;  %v191_v16 = vadd.f32 %v275_v31, %v273_v20  ;;  %v190_v17 = vadd.f32 %v274_v51, %v272_v18 }
  0x36   :  { %v1263_v21 = vadd.f32 %v529_v7, %v488_v6  ;;  %v531_v22 = vrot.slane %v299_v57, 2  ;;  %v1265_v24 = vadd.f32 %v525_v62, %v487_v58  ;;  %v1267_v29 = vadd.f32 %v526_v3, %v486_v9 }
  0x37   :  { %651 = vrot.lane.b32.xlu2 %v1228_v23, %s1101_s0  ;;  %v335_v26 = vadd.f32 %v331_v12, %v223_v8  ;;  %v336_v36 = vadd.f32 %v332_v14, %v224_v10  ;;  %v433_v28 = vsel %vm397_vm0, %v431_v13, %v432_v11  ;;  %v530_v37 = vrot.slane %v298_v2, 2 }
  0x38   :  { %649 = vrot.lane.b32.xlu1 %v1230_v25, %s1101_s0  ;;  %v334_v32 = vadd.f32 %v222_v4, %v191_v16  ;;  %v333_v15 = vadd.f32 %v221_v50, %v190_v17  ;;  %v491_v38 = vadd.f32 %v432_v11, %v299_v57  ;;  %v489_v18 = vadd.f32 %v429_v42, %v1234_v30 }
  0x39   :  { %647 = vrot.lane.b32.xlu0 %v1232_v27, %s1101_s0  ;;  %v490_v20 = vadd.f32 %v433_v28, %v298_v2  ;;  %v437_v39 = vrot.slane %v335_v26, 1  ;;  %v438_v43 = vrot.slane %v336_v36, 1  ;;  %v532_v40 = vsel %vm496_vm1, %v530_v37, %v531_v22 }
  0x3a   :  { %v435_v44 = vrot.slane %v334_v32, 1  ;;  %v434_v47 = vrot.slane %v333_v15, 1  ;;  %v1278_v31 = vadd.f32 %v531_v22, %v491_v38  ;;  %v1280_v49 = vadd.f32 %v528_v48, %v489_v18 }
  0x3b   :  { %v1282_v51 = vadd.f32 %v532_v40, %v490_v20  ;;  %v439_v30 = vsel %vm397_vm0, %v437_v39, %v438_v43  ;;  %v536_v42 = vrot.slane %v335_v26, 2  ;;  %v537_v19 = vrot.slane %v336_v36, 2 }
  0x3c   :  { %v534_v56 = vrot.slane %v334_v32, 2  ;;  %v436_v57 = vsel %vm397_vm0, %v434_v47, %v435_v44  ;;  %v533_v50 = vrot.slane %v333_v15, 2  ;;  %v494_v62 = vadd.f32 %v439_v30, %v335_v26 }
  0x3d   :  { %v538_v48 = vsel %vm496_vm1, %v536_v42, %v537_v19  ;;  %v493_v63 = vadd.f32 %v435_v44, %v334_v32  ;;  %v492_v0 = vadd.f32 %v436_v57, %v333_v15  ;;  %v495_v8 = vadd.f32 %v438_v43, %v336_v36 }
  0x3e   :  { %v535_v2 = vsel %vm496_vm1, %v533_v50, %v534_v56  ;;  %v1294_v4 = vadd.f32 %v538_v48, %v494_v62 }
  0x3f   :  { %657 = vrot.lane.b32.xlu2 %v1246_v52, %s1101_s0  ;;  %v1296_v6 = vadd.f32 %v534_v56, %v493_v63  ;;  %v1298_v7 = vadd.f32 %v535_v2, %v492_v0  ;;  %v1306_v58 = vadd.f32 %v537_v19, %v495_v8  ;;  %v1103_v19 = vmov 0.0  }
  0x40   :  { %655 = vrot.lane.b32.xlu1 %v1249_v53, %s1101_s0 }
  0x41   :  { %653 = vrot.lane.b32.xlu0 %v1251_v54, %s1101_s0 }
  0x47   :  { %663 = vrot.lane.b32.xlu2 %v1263_v21, %s1101_s0 }
  0x48   :  { %661 = vrot.lane.b32.xlu1 %v1265_v24, %s1101_s0 }
  0x49   :  { %659 = vrot.lane.b32.xlu0 %v1267_v29, %s1101_s0 }
  0x4f   :  { %669 = vrot.lane.b32.xlu2 %v1278_v31, %s1101_s0 }
  0x50   :  { %667 = vrot.lane.b32.xlu1 %v1282_v51, %s1101_s0 }
  0x51   :  { %665 = vrot.lane.b32.xlu0 %v1280_v49, %s1101_s0 }
  0x57   :  { %675 = vrot.lane.b32.xlu2 %v1294_v4, %s1101_s0 }
  0x58   :  { %673 = vrot.lane.b32.xlu1 %v1296_v6, %s1101_s0 }
  0x59   :  { %671 = vrot.lane.b32.xlu0 %v1298_v7, %s1101_s0 }
  0x5f   :  { %737 = vrot.lane.b32.xlu2 %v1154_v46, %s1102_s1 }
  0x60   :  { %735 = vrot.lane.b32.xlu1 %v1174_v5, %s1102_s1 }
  0x61   :  { %677 = vrot.lane.b32.xlu0 %v1306_v58, %s1101_s0 }
  0x67   :  { %743 = vrot.lane.b32.xlu2 %v1170_v1, %s1102_s1 }
  0x68   :  { %741 = vrot.lane.b32.xlu1 %v1152_v45, %s1102_s1 }
  0x69   :  { %739 = vrot.lane.b32.xlu0 %v1194_v34, %s1102_s1 }
  0x6f   :  { %749 = vrot.lane.b32.xlu2 %v1165_v55, %s1102_s1 }
  0x70   :  { %747 = vrot.lane.b32.xlu1 %v1196_v35, %s1102_s1 }
  0x71   :  { %745 = vrot.lane.b32.xlu0 %v1145_v41, %s1102_s1  ;;  %v1326_v9 = vpop.permute.xlu2 %633 }
  0x77   :  { %755 = vrot.lane.b32.xlu2 %v1214_v60, %s1102_s1 }
  0x78   :  { %753 = vrot.lane.b32.xlu1 %v1216_v61, %s1102_s1 }
  0x79   :  { %751 = vrot.lane.b32.xlu0 %v1192_v33, %s1102_s1  ;;  %v632_v11 = vpop.permute.xlu2 %631 }
  0x7a   :  { %v711_v57 = vadd.f32 %v632_v11, %v1170_v1 }
  0x7f   :  { %761 = vrot.lane.b32.xlu2 %v1230_v25, %s1102_s1 }
  0x80   :  { %759 = vrot.lane.b32.xlu1 %v1232_v27, %s1102_s1 }
  0x81   :  { %757 = vrot.lane.b32.xlu0 %v1211_v59, %s1102_s1  ;;  %v1340_v10 = vpop.permute.xlu2 %639 }
  0x87   :  { %767 = vrot.lane.b32.xlu2 %v1249_v53, %s1102_s1 }
  0x88   :  { %765 = vrot.lane.b32.xlu1 %v1251_v54, %s1102_s1 }
  0x89   :  { %763 = vrot.lane.b32.xlu0 %v1228_v23, %s1102_s1  ;;  %v1348_v3 = vpop.permute.xlu2 %645 }
  0x8a   :  { %v1350_v13 = vpop.permute.xlu1 %629 }
  0x8b   :  { %v626_v12 = vpop.permute.xlu0 %625 }
  0x8c   :  { %v708_v40 = vadd.f32 %v626_v12, %v1154_v46 }
  0x8f   :  { %773 = vrot.lane.b32.xlu2 %v1265_v24, %s1102_s1 }
  0x90   :  { %771 = vrot.lane.b32.xlu1 %v1267_v29, %s1102_s1 }
  0x91   :  { %769 = vrot.lane.b32.xlu0 %v1246_v52, %s1102_s1  ;;  %v1358_v14 = vpop.permute.xlu2 %651 }
  0x92   :  { %v638_v16 = vpop.permute.xlu1 %637 }
  0x93   :  { %v624_v17 = vpop.permute.xlu0 %623  ;;  %v714_v0 = vadd.f32 %v638_v16, %v1165_v55 }
  0x97   :  { %779 = vrot.lane.b32.xlu2 %v1282_v51, %s1102_s1 }
  0x98   :  { %777 = vrot.lane.b32.xlu1 %v1280_v49, %s1102_s1 }
  0x99   :  { %775 = vrot.lane.b32.xlu0 %v1263_v21, %s1102_s1  ;;  %v1366_v22 = vpop.permute.xlu2 %657 }
  0x9a   :  { %v628_v26 = vpop.permute.xlu1 %627 }
  0x9b   :  { %v1368_v36 = vpop.permute.xlu0 %635 }
  0x9f   :  { %785 = vrot.lane.b32.xlu2 %v1296_v6, %s1102_s1 }
  0xa0   :  { %783 = vrot.lane.b32.xlu1 %v1298_v7, %s1102_s1 }
  0xa1   :  { %781 = vrot.lane.b32.xlu0 %v1278_v31, %s1102_s1  ;;  %v1376_v28 = vpop.permute.xlu2 %663 }
  0xa2   :  { %v644_v37 = vpop.permute.xlu1 %643 }
  0xa3   :  { %v1378_v32 = vpop.permute.xlu0 %641  ;;  %v717_v11 = vadd.f32 %v644_v37, %v1214_v60 }
  0xa8   :  { %789 = vrot.lane.b32.xlu1 %v1306_v58, %s1102_s1 }
  0xa9   :  { %787 = vrot.lane.b32.xlu0 %v1294_v4, %s1102_s1  ;;  %v1384_v15 = vpop.permute.xlu2 %669 }
  0xaa   :  { %v650_v38 = vpop.permute.xlu1 %649 }
  0xab   :  { %v1386_v18 = vpop.permute.xlu0 %647  ;;  %v720_v60 = vadd.f32 %v650_v38, %v1230_v25 }
  0xb1   :  { %v1388_v20 = vpop.permute.xlu2 %675 }
  0xb2   :  { %v656_v39 = vpop.permute.xlu1 %655 }
  0xb3   :  { %v1390_v43 = vpop.permute.xlu0 %653 }
  0xb9   :  { %v738_v44 = vpop.permute.xlu2 %737 }
  0xba   :  { %v1393_v47 = vpop.permute.xlu1 %661  ;;  %v820_v30 = vadd.f32 %v738_v44, %v708_v40  ;;  %v707_v44 = vadd.f32 %v624_v17, %v1174_v5  ;;  %v710_v5 = vadd.f32 %v1350_v13, %v1152_v45  ;;  %v709_v17 = vadd.f32 %v628_v26, %v1194_v34 }
  0xbb   :  { %v1395_v42 = vpop.permute.xlu0 %659  ;;  %v723_v45 = vadd.f32 %v656_v39, %v1249_v53  ;;  %v712_v34 = vadd.f32 %v1326_v9, %v1145_v41  ;;  %v713_v13 = vadd.f32 %v1368_v36, %v1196_v35  ;;  %v726_v35 = vadd.f32 %v1393_v47, %v1265_v24 }
  0xbc   :  { %vm848_vm3 = vcmp.ge.f32.partialorder %v820_v30, 27.0  ;;  %v715_v9 = vadd.f32 %v1340_v10, %v1192_v33  ;;  %v716_v36 = vadd.f32 %v1378_v32, %v1216_v61  ;;  %v718_v10 = vadd.f32 %v1348_v3, %v1211_v59 }
  0xbd   :  { %v984_v56 = vsel %vm848_vm3, 1.0, %v1103_v19  ;;  %v719_v32 = vadd.f32 %v1386_v18, %v1232_v27  ;;  %v721_v3 = vadd.f32 %v1358_v14, %v1228_v23  ;;  %v722_v18 = vadd.f32 %v1390_v43, %v1251_v54 }
  0xbe   :  { %934 = vst.msk [vmem:[#allocation8 + $0x8] sm:$0x3f] %vm933_vm2, %v984_v56  ;;  %v724_v54 = vadd.f32 %v1366_v22, %v1246_v52  ;;  %v725_v14 = vadd.f32 %v1395_v42, %v1267_v29  ;;  %v727_v52 = vadd.f32 %v1376_v28, %v1263_v21  ;;  %v730_v21 = vadd.f32 %v1384_v15, %v1278_v31 }
  0xbf   :  { %v733_v31 = vadd.f32 %v1388_v20, %v1294_v4 }
  0xc1   :  { %v744_v50 = vpop.permute.xlu2 %743 }
  0xc2   :  { %v1400_v62 = vpop.permute.xlu1 %667  ;;  %v823_v48 = vadd.f32 %v744_v50, %v711_v57 }
  0xc3   :  { %v1402_v46 = vpop.permute.xlu0 %665  ;;  %v729_v61 = vadd.f32 %v1400_v62, %v1282_v51 }
  0xc4   :  { %vm851_vm5 = vcmp.ge.f32.partialorder %v823_v48, 27.0  ;;  %v728_v29 = vadd.f32 %v1402_v46, %v1280_v49 }
  0xc5   :  { %v987_v63 = vsel %vm851_vm5, 1.0, %v1103_v19 }
  0xc6   :  { %937 = vst.msk [vmem:[#allocation8 + $0x20] sm:$0xff] %vm931_vm4, %v987_v63 }
  0xc9   :  { %v750_v2 = vpop.permute.xlu2 %749 }
  0xca   :  { %v1407_v8 = vpop.permute.xlu1 %673  ;;  %v826_v12 = vadd.f32 %v750_v2, %v714_v0 }
  0xcb   :  { %v1409_v40 = vpop.permute.xlu0 %671  ;;  %v732_v27 = vadd.f32 %v1407_v8, %v1296_v6 }
  0xcc   :  { %vm854_vm6 = vcmp.ge.f32.partialorder %v826_v12, 27.0  ;;  %v731_v49 = vadd.f32 %v1409_v40, %v1298_v7 }
  0xcd   :  { %v990_v1 = vsel %vm854_vm6, 1.0, %v1103_v19 }
  0xce   :  { %940 = vst.msk [vmem:[#allocation8 + $0x38] sm:$0x3f] %vm933_vm2, %v990_v1 }
  0xd1   :  { %v756_v30 = vpop.permute.xlu2 %755 }
  0xd2   :  { %v829_v56 = vadd.f32 %v756_v30, %v717_v11  ;;  %v736_v57 = vpop.permute.xlu1 %735 }
  0xd3   :  { %v1415_v50 = vpop.permute.xlu0 %677  ;;  %v819_v55 = vadd.f32 %v736_v57, %v707_v44 }
  0xd4   :  { %vm857_vm7 = vcmp.ge.f32.partialorder %v829_v56, 27.0  ;;  %v734_v7 = vadd.f32 %v1415_v50, %v1306_v58 }
  0xd5   :  { %v993_v16 = vsel %vm857_vm7, 1.0, %v1103_v19  ;;  %vm847_vm8 = vcmp.ge.f32.partialorder %v819_v55, 27.0 }
  0xd6   :  { %943 = vst.msk [vmem:[#allocation8 + $0x50] sm:$0xff] %vm931_vm4, %v993_v16  ;;  %v983_v48 = vsel %vm847_vm8, 1.0, %v1103_v19 }
  0xd7   :  { %932 = vst.msk [vmem:[#allocation8] sm:$0xff] %vm931_vm4, %v983_v48 }
  0xd9   :  { %v762_v37 = vpop.permute.xlu2 %761 }
  0xda   :  { %v832_v63 = vadd.f32 %v762_v37, %v720_v60  ;;  %v742_v0 = vpop.permute.xlu1 %741 }
  0xdb   :  { %v740_v2 = vpop.permute.xlu0 %739  ;;  %v822_v12 = vadd.f32 %v742_v0, %v710_v5 }
  0xdc   :  { %v821_v1 = vadd.f32 %v740_v2, %v709_v17  ;;  %vm860_vm9 = vcmp.ge.f32.partialorder %v832_v63, 27.0 }
  0xdd   :  { %v996_v11 = vsel %vm860_vm9, 1.0, %v1103_v19  ;;  %vm850_vm10 = vcmp.ge.f32.partialorder %v822_v12, 27.0 }
  0xde   :  { %vm849_vm11 = vcmp.ge.f32.partialorder %v821_v1, 27.0  ;;  %946 = vst.msk [vmem:[#allocation8 + $0x68] sm:$0x3f] %vm933_vm2, %v996_v11  ;;  %v986_v25 = vsel %vm850_vm10, 1.0, %v1103_v19 }
  0xdf   :  { %v985_v38 = vsel %vm849_vm11, 1.0, %v1103_v19  ;;  %936 = vst.msk [vmem:[#allocation8 + $0x18] sm:$0x3f] %vm933_vm2, %v986_v25 }
  0xe0   :  { %935 = vst.msk [vmem:[#allocation8 + $0x10] sm:$0xff] %vm931_vm4, %v985_v38 }
  0xe1   :  { %v768_v26 = vpop.permute.xlu2 %767 }
  0xe2   :  { %v835_v44 = vadd.f32 %v768_v26, %v723_v45  ;;  %v748_v30 = vpop.permute.xlu1 %747 }
  0xe3   :  { %v746_v56 = vpop.permute.xlu0 %745  ;;  %v825_v57 = vadd.f32 %v748_v30, %v713_v13 }
  0xe4   :  { %v824_v55 = vadd.f32 %v746_v56, %v712_v34  ;;  %vm863_vm12 = vcmp.ge.f32.partialorder %v835_v44, 27.0 }
  0xe5   :  { %v999_v16 = vsel %vm863_vm12, 1.0, %v1103_v19  ;;  %vm853_vm13 = vcmp.ge.f32.partialorder %v825_v57, 27.0 }
  0xe6   :  { %vm852_vm14 = vcmp.ge.f32.partialorder %v824_v55, 27.0  ;;  %949 = vst.msk [vmem:[#allocation8 + $0x80] sm:$0xff] %vm931_vm4, %v999_v16  ;;  %v989_v53 = vsel %vm853_vm13, 1.0, %v1103_v19 }
  0xe7   :  { %v988_v41 = vsel %vm852_vm14, 1.0, %v1103_v19  ;;  %939 = vst.msk [vmem:[#allocation8 + $0x30] sm:$0xff] %vm931_vm4, %v989_v53 }
  0xe8   :  { %938 = vst.msk [vmem:[#allocation8 + $0x28] sm:$0x3f] %vm933_vm2, %v988_v41 }
  0xe9   :  { %v774_v39 = vpop.permute.xlu2 %773 }
  0xea   :  { %v838_v48 = vadd.f32 %v774_v39, %v726_v35  ;;  %v754_v60 = vpop.permute.xlu1 %753 }
  0xeb   :  { %v752_v5 = vpop.permute.xlu0 %751  ;;  %v828_v17 = vadd.f32 %v754_v60, %v716_v36 }
  0xec   :  { %v827_v37 = vadd.f32 %v752_v5, %v715_v9  ;;  %vm866_vm15 = vcmp.ge.f32.partialorder %v838_v48, 27.0 }
  0xed   :  { %v1002_v63 = vsel %vm866_vm15, 1.0, %v1103_v19  ;;  %vm856_vm0 = vcmp.ge.f32.partialorder %v828_v17, 27.0 }
  0xee   :  { %vm855_vm1 = vcmp.ge.f32.partialorder %v827_v37, 27.0  ;;  %952 = vst.msk [vmem:[#allocation8 + $0x98] sm:$0x3f] %vm933_vm2, %v1002_v63  ;;  %v992_v24 = vsel %vm856_vm0, 1.0, %v1103_v19 }
  0xef   :  { %v991_v33 = vsel %vm855_vm1, 1.0, %v1103_v19  ;;  %942 = vst.msk [vmem:[#allocation8 + $0x48] sm:$0x3f] %vm933_vm2, %v992_v24 }
  0xf0   :  { %941 = vst.msk [vmem:[#allocation8 + $0x40] sm:$0xff] %vm931_vm4, %v991_v33 }
  0xf1   :  { %v780_v47 = vpop.permute.xlu2 %779 }
  0xf2   :  { %v841_v0 = vadd.f32 %v780_v47, %v729_v61  ;;  %v760_v2 = vpop.permute.xlu1 %759 }
  0xf3   :  { %v758_v12 = vpop.permute.xlu0 %757  ;;  %v831_v1 = vadd.f32 %v760_v2, %v719_v32 }
  0xf4   :  { %v830_v11 = vadd.f32 %v758_v12, %v718_v10  ;;  %vm869_vm3 = vcmp.ge.f32.partialorder %v841_v0, 27.0 }
  0xf5   :  { %v1005_v25 = vsel %vm869_vm3, 1.0, %v1103_v19  ;;  %vm859_vm5 = vcmp.ge.f32.partialorder %v831_v1, 27.0 }
  0xf6   :  { %vm858_vm6 = vcmp.ge.f32.partialorder %v830_v11, 27.0  ;;  %955 = vst.msk [vmem:[#allocation8 + $0xb0] sm:$0xff] %vm931_vm4, %v1005_v25  ;;  %v995_v51 = vsel %vm859_vm5, 1.0, %v1103_v19 }
  0xf7   :  { %v994_v59 = vsel %vm858_vm6, 1.0, %v1103_v19  ;;  %945 = vst.msk [vmem:[#allocation8 + $0x60] sm:$0xff] %vm931_vm4, %v995_v51 }
  0xf8   :  { %944 = vst.msk [vmem:[#allocation8 + $0x58] sm:$0x3f] %vm933_vm2, %v994_v59 }
  0xf9   :  { %v786_v62 = vpop.permute.xlu2 %785 }
  0xfa   :  { %v844_v38 = vadd.f32 %v786_v62, %v732_v27  ;;  %v766_v45 = vpop.permute.xlu1 %765 }
  0xfb   :  { %v764_v34 = vpop.permute.xlu0 %763  ;;  %v834_v13 = vadd.f32 %v766_v45, %v722_v18 }
  0xfc   :  { %v833_v26 = vadd.f32 %v764_v34, %v721_v3  ;;  %vm872_vm7 = vcmp.ge.f32.partialorder %v844_v38, 27.0 }
  0xfd   :  { %v1008_v44 = vsel %vm872_vm7, 1.0, %v1103_v19  ;;  %vm862_vm8 = vcmp.ge.f32.partialorder %v834_v13, 27.0 }
  0xfe   :  { %vm861_vm9 = vcmp.ge.f32.partialorder %v833_v26, 27.0  ;;  %958 = vst.msk [vmem:[#allocation8 + $0xc8] sm:$0x3f] %vm933_vm2, %v1008_v44  ;;  %v998_v6 = vsel %vm862_vm8, 1.0, %v1103_v19 }
  0xff   :  { %v997_v23 = vsel %vm861_vm9, 1.0, %v1103_v19  ;;  %948 = vst.msk [vmem:[#allocation8 + $0x78] sm:$0x3f] %vm933_vm2, %v998_v6 }
 0x100   :  { %947 = vst.msk [vmem:[#allocation8 + $0x70] sm:$0xff] %vm931_vm4, %v997_v23 }
 0x102   :  { %v772_v43 = vpop.permute.xlu1 %771 }
 0x103   :  { %v770_v8 = vpop.permute.xlu0 %769  ;;  %v837_v30 = vadd.f32 %v772_v43, %v725_v14 }
 0x104   :  { %v836_v56 = vadd.f32 %v770_v8, %v724_v54 }
 0x105   :  { %vm865_vm10 = vcmp.ge.f32.partialorder %v837_v30, 27.0 }
 0x106   :  { %vm864_vm11 = vcmp.ge.f32.partialorder %v836_v56, 27.0  ;;  %v1001_v57 = vsel %vm865_vm10, 1.0, %v1103_v19 }
 0x107   :  { %v1000_v55 = vsel %vm864_vm11, 1.0, %v1103_v19  ;;  %951 = vst.msk [vmem:[#allocation8 + $0x90] sm:$0xff] %vm931_vm4, %v1001_v57 }
 0x108   :  { %950 = vst.msk [vmem:[#allocation8 + $0x88] sm:$0x3f] %vm933_vm2, %v1000_v55 }
 0x10a   :  { %v778_v22 = vpop.permute.xlu1 %777 }
 0x10b   :  { %v776_v42 = vpop.permute.xlu0 %775  ;;  %v840_v16 = vadd.f32 %v778_v22, %v728_v29 }
 0x10c   :  { %v839_v53 = vadd.f32 %v776_v42, %v727_v52 }
 0x10d   :  { %vm868_vm12 = vcmp.ge.f32.partialorder %v840_v16, 27.0 }
 0x10e   :  { %vm867_vm13 = vcmp.ge.f32.partialorder %v839_v53, 27.0  ;;  %v1004_v41 = vsel %vm868_vm12, 1.0, %v1103_v19 }
 0x10f   :  { %v1003_v35 = vsel %vm867_vm13, 1.0, %v1103_v19  ;;  %954 = vst.msk [vmem:[#allocation8 + $0xa8] sm:$0x3f] %vm933_vm2, %v1004_v41 }
 0x110   :  { %953 = vst.msk [vmem:[#allocation8 + $0xa0] sm:$0xff] %vm931_vm4, %v1003_v35 }
 0x112   :  { %v784_v28 = vpop.permute.xlu1 %783 }
 0x113   :  { %v782_v46 = vpop.permute.xlu0 %781  ;;  %v843_v9 = vadd.f32 %v784_v28, %v731_v49 }
 0x114   :  { %v842_v36 = vadd.f32 %v782_v46, %v730_v21 }
 0x115   :  { %vm871_vm14 = vcmp.ge.f32.partialorder %v843_v9, 27.0 }
 0x116   :  { %vm870_vm15 = vcmp.ge.f32.partialorder %v842_v36, 27.0  ;;  %v1007_v39 = vsel %vm871_vm14, 1.0, %v1103_v19 }
 0x117   :  { %v1006_v48 = vsel %vm870_vm15, 1.0, %v1103_v19  ;;  %957 = vst.msk [vmem:[#allocation8 + $0xc0] sm:$0xff] %vm931_vm4, %v1007_v39 }
 0x118   :  { %956 = vst.msk [vmem:[#allocation8 + $0xb8] sm:$0x3f] %vm933_vm2, %v1006_v48 }
 0x11a   :  { %v790_v15 = vpop.permute.xlu1 %789 }
 0x11b   :  { %v788_v40 = vpop.permute.xlu0 %787  ;;  %v846_v60 = vadd.f32 %v790_v15, %v734_v7 }
 0x11c   :  { %v845_v5 = vadd.f32 %v788_v40, %v733_v31 }
 0x11d   :  { %vm874_vm0 = vcmp.ge.f32.partialorder %v846_v60, 27.0 }
 0x11e   :  { %vm873_vm1 = vcmp.ge.f32.partialorder %v845_v5, 27.0  ;;  %v1010_v17 = vsel %vm874_vm0, 1.0, %v1103_v19 }
 0x11f   :  { %v1009_v37 = vsel %vm873_vm1, 1.0, %v1103_v19  ;;  %960 = vst.msk [vmem:[#allocation8 + $0xd8] sm:$0x3f] %vm933_vm2, %v1010_v17 }
 0x120   :  { %959 = vst.msk [vmem:[#allocation8 + $0xd0] sm:$0xff] %vm931_vm4, %v1009_v37 }
 0x121   :  { %973 = dma.vmem_to_hbm [thread:$0]  %s966_s23, 3584, %s968_s26, [#allocation5], %s1098_s17, %s1098_s17, %s1099_s18  }
 0x122   :  { %1095 = dma.done.wait [#allocation5], 3584  }
 0x123   :  { %1096 = vsyncadd [#allocation5], 4294963712 }
 0x124   :  { %978 = vsyncpa [#allocation4], 1 }
 0x125   :  { %979 = vsyncpa [#allocation7], 1 }
 0x126   :  { %980 = vsyncpa [#allocation5], 1 }

</bundles_post_ra>
